<compile_context>
chip_gen: v7x
topology: tpu7x:2x2x1
jax: 0.10.0
libtpu: 0.0.40
codegen_flags: <defaults>
</compile_context>

<pallas_src>
import jax
import jax.numpy as jnp
from jax.experimental import pallas as pl
from jax.experimental.pallas import tpu as pltpu

EMBED_DIM = 1     # module default; the broadcast-multiply input projection assumes E == 1
HIDDEN_DIM = 32
OUTPUT_DIM = 1
O_PAD = 128       # lane-dense padded FC output width (only column 0 is real)


def rnn_kernel(x_ref, w_ih_ref, bias_ref, w_hh_ref, w_fc_ref, b_fc_ref, out_ref):
    # x_ref:    (T, B, 1)   time-major input (E == 1)
    # w_ih_ref: (1, H)      input->hidden weight row (E == 1)
    # bias_ref: (1, H)      b_ih + b_hh, pre-combined
    # w_hh_ref: (H, H)      hidden->hidden weight, transposed so recurrence is h @ W
    # w_fc_ref: (H, O_PAD)  FC weight, transposed + zero-padded to full lane width
    # b_fc_ref: (1, O_PAD)  FC bias, zero-padded
    # out_ref:  (B, O_PAD)  lane-dense output; column 0 holds the FC result
    T = x_ref.shape[0]

    # Hoisted input projection + fused bias: all T pre-activations in one VPU
    # broadcast-multiply, completely off the serial critical path.
    pre = x_ref[...] * w_ih_ref[...] + bias_ref[...]          # (T, B, H)

    w_hh = w_hh_ref[...]                                       # hoist weight load

    # Serial recurrence, fully unrolled (T static & small). h_{-1} = 0, so step 0
    # needs no matmul. Per-step body is only h @ W_hh (+pre[t]) and tanh.
    # (On v5e/v6e the per-step (B,32)x(32,32) MXU push/pop sits on the critical path;
    #  a VPU MAC alternative could be evaluated via bundle dumps, MXU kept here.)
    h = jnp.tanh(pre[0])                                       # (B, H)
    for t in range(1, T):
        h = jnp.tanh(pre[t] + jnp.dot(h, w_hh, preferred_element_type=jnp.float32))

    # FC with output dim padded to a full 128-lane width -> unmasked lane-dense store.
    out_ref[...] = (jnp.dot(h, w_fc_ref[...], preferred_element_type=jnp.float32)
                    + b_fc_ref[...])


def rnn_model_forward(x, params):
    """x: (B, T, E) float32, batch_first like the PyTorch module. Returns (1, B, O)."""
    w_ih, w_hh, b_ih, b_hh, w_fc, b_fc = params
    B, T, E = x.shape
    assert E == 1, "kernel's broadcast input projection assumes embed_dim == 1"
    H = w_hh.shape[0]
    O = w_fc.shape[0]

    # Glue (all tiny, handled by XLA): time-major x, transposed weights, combined bias,
    # lane-padded FC weight/bias.
    x_tb1 = jnp.transpose(x, (1, 0, 2)).astype(jnp.float32)               # (T, B, 1)
    w_ih_row = w_ih.T.astype(jnp.float32).reshape(E, H)                   # (1, H)
    bias = (b_ih + b_hh).reshape(1, H).astype(jnp.float32)                # (1, H)
    w_hh_t = w_hh.T.astype(jnp.float32)                                   # (H, H)
    w_fc_pad = jnp.zeros((H, O_PAD), jnp.float32).at[:, :O].set(w_fc.T.astype(jnp.float32))
    b_fc_pad = jnp.zeros((1, O_PAD), jnp.float32).at[:, :O].set(
        b_fc.reshape(1, O).astype(jnp.float32))

    vmem = pl.BlockSpec(memory_space=pltpu.MemorySpace.VMEM)
    out_pad = pl.pallas_call(
        rnn_kernel,
        out_shape=jax.ShapeDtypeStruct((B, O_PAD), jnp.float32),
        in_specs=[vmem] * 6,
        out_specs=vmem,
    )(x_tb1, w_ih_row, bias, w_hh_t, w_fc_pad, b_fc_pad)

    return out_pad[None, :, :O]   # (1, B, O), matching Linear(hidden[:-1])


def reference_forward(x, params):
    """Plain-JAX reference of the same PyTorch forward (layer-0 recurrence + FC)."""
    w_ih, w_hh, b_ih, b_hh, w_fc, b_fc = params
    B, T, E = x.shape
    H = w_hh.shape[0]
    h = jnp.zeros((B, H), jnp.float32)
    for t in range(T):
        h = jnp.tanh(x[:, t, :] @ w_ih.T + b_ih + h @ w_hh.T + b_hh)
    return (h @ w_fc.T + b_fc)[None, :, :]  # (1, B, O)


def init_params(key, embed_dim=EMBED_DIM, hidden_dim=HIDDEN_DIM, output_dim=OUTPUT_DIM):
    """Deterministic init matching PyTorch's U(-1/sqrt(H), 1/sqrt(H)) convention."""
    ks = jax.random.split(key, 6)
    s = 1.0 / jnp.sqrt(hidden_dim)
    w_ih = jax.random.uniform(ks[0], (hidden_dim, embed_dim), jnp.float32, -s, s)
    w_hh = jax.random.uniform(ks[1], (hidden_dim, hidden_dim), jnp.float32, -s, s)
    b_ih = jax.random.uniform(ks[2], (hidden_dim,), jnp.float32, -s, s)
    b_hh = jax.random.uniform(ks[3], (hidden_dim,), jnp.float32, -s, s)
    w_fc = jax.random.uniform(ks[4], (output_dim, hidden_dim), jnp.float32, -s, s)
    b_fc = jax.random.uniform(ks[5], (output_dim,), jnp.float32, -s, s)
    return (w_ih, w_hh, b_ih, b_hh, w_fc, b_fc)


if __name__ == "__main__":
    key = jax.random.PRNGKey(0)
    k_param, k_x = jax.random.split(key)

    B, T = 2, 8
    params = init_params(k_param)
    x = jax.random.normal(k_x, (B, T, EMBED_DIM), jnp.float32)  # batch_first, like PyTorch

    out = jax.block_until_ready(rnn_model_forward(x, params))   # (1, B, 1)
    ref = jax.block_until_ready(reference_forward(x, params))

    assert out.shape == (1, B, OUTPUT_DIM), out.shape
    assert jnp.allclose(out, ref, atol=1e-5, rtol=1e-5), (out, ref)
    print("KERNEL_OK")
</pallas_src>

<mosaic_0001>
module attributes {stable_mosaic.version = 11 : i64} {
  func.func @rnn_kernel(%arg0: memref<8x2x1xf32, #tpu.memory_space<vmem>>, %arg1: memref<1x32xf32, #tpu.memory_space<vmem>>, %arg2: memref<1x32xf32, #tpu.memory_space<vmem>>, %arg3: memref<32x32xf32, #tpu.memory_space<vmem>>, %arg4: memref<32x128xf32, #tpu.memory_space<vmem>>, %arg5: memref<1x128xf32, #tpu.memory_space<vmem>>, %arg6: memref<2x128xf32, #tpu.memory_space<vmem>>) attributes {dimension_semantics = [], scalar_prefetch = 0 : i64, scratch_operands = 0 : i64, tpu.core_type = #tpu.core_type<tc>} {
    %c0 = arith.constant 0 : index
    %c0_0 = arith.constant 0 : index
    %c0_1 = arith.constant 0 : index
    %0 = vector.load %arg0[%c0, %c0_0, %c0_1] : memref<8x2x1xf32, #tpu.memory_space<vmem>>, vector<8x2x1xf32>
    %c0_2 = arith.constant 0 : index
    %c0_3 = arith.constant 0 : index
    %1 = vector.load %arg1[%c0_2, %c0_3] : memref<1x32xf32, #tpu.memory_space<vmem>>, vector<1x32xf32>
    %2 = vector.shape_cast %1 : vector<1x32xf32> to vector<1x1x32xf32>
    %3 = vector.broadcast %0 : vector<8x2x1xf32> to vector<8x2x32xf32>
    %4 = vector.broadcast %2 : vector<1x1x32xf32> to vector<8x2x32xf32>
    %5 = arith.mulf %3, %4 : vector<8x2x32xf32>
    %c0_4 = arith.constant 0 : index
    %c0_5 = arith.constant 0 : index
    %6 = vector.load %arg2[%c0_4, %c0_5] : memref<1x32xf32, #tpu.memory_space<vmem>>, vector<1x32xf32>
    %7 = vector.shape_cast %6 : vector<1x32xf32> to vector<1x1x32xf32>
    %8 = vector.broadcast %7 : vector<1x1x32xf32> to vector<8x2x32xf32>
    %9 = arith.addf %5, %8 : vector<8x2x32xf32>
    %c0_6 = arith.constant 0 : index
    %c0_7 = arith.constant 0 : index
    %10 = vector.load %arg3[%c0_6, %c0_7] : memref<32x32xf32, #tpu.memory_space<vmem>>, vector<32x32xf32>
    %11 = vector.extract_strided_slice %9 {offsets = [0, 0, 0], sizes = [1, 2, 32], strides = [1, 1, 1]} : vector<8x2x32xf32> to vector<1x2x32xf32>
    %12 = vector.shape_cast %11 : vector<1x2x32xf32> to vector<2x32xf32>
    %13 = math.tanh %12 : vector<2x32xf32>
    %14 = vector.extract_strided_slice %9 {offsets = [1, 0, 0], sizes = [1, 2, 32], strides = [1, 1, 1]} : vector<8x2x32xf32> to vector<1x2x32xf32>
    %15 = vector.shape_cast %14 : vector<1x2x32xf32> to vector<2x32xf32>
    %cst = arith.constant dense<0.000000e+00> : vector<2x32xf32>
    %16 = tpu.matmul %13, %10, %cst {dimension_numbers = #tpu.dot_dimension_numbers<[1], [0], [0], [1], [0, 0, 1, 1], [], []>} : vector<2x32xf32>, vector<32x32xf32>, vector<2x32xf32> -> vector<2x32xf32>
    %17 = arith.addf %15, %16 : vector<2x32xf32>
    %18 = math.tanh %17 : vector<2x32xf32>
    %19 = vector.extract_strided_slice %9 {offsets = [2, 0, 0], sizes = [1, 2, 32], strides = [1, 1, 1]} : vector<8x2x32xf32> to vector<1x2x32xf32>
    %20 = vector.shape_cast %19 : vector<1x2x32xf32> to vector<2x32xf32>
    %cst_8 = arith.constant dense<0.000000e+00> : vector<2x32xf32>
    %21 = tpu.matmul %18, %10, %cst_8 {dimension_numbers = #tpu.dot_dimension_numbers<[1], [0], [0], [1], [0, 0, 1, 1], [], []>} : vector<2x32xf32>, vector<32x32xf32>, vector<2x32xf32> -> vector<2x32xf32>
    %22 = arith.addf %20, %21 : vector<2x32xf32>
    %23 = math.tanh %22 : vector<2x32xf32>
    %24 = vector.extract_strided_slice %9 {offsets = [3, 0, 0], sizes = [1, 2, 32], strides = [1, 1, 1]} : vector<8x2x32xf32> to vector<1x2x32xf32>
    %25 = vector.shape_cast %24 : vector<1x2x32xf32> to vector<2x32xf32>
    %cst_9 = arith.constant dense<0.000000e+00> : vector<2x32xf32>
    %26 = tpu.matmul %23, %10, %cst_9 {dimension_numbers = #tpu.dot_dimension_numbers<[1], [0], [0], [1], [0, 0, 1, 1], [], []>} : vector<2x32xf32>, vector<32x32xf32>, vector<2x32xf32> -> vector<2x32xf32>
    %27 = arith.addf %25, %26 : vector<2x32xf32>
    %28 = math.tanh %27 : vector<2x32xf32>
    %29 = vector.extract_strided_slice %9 {offsets = [4, 0, 0], sizes = [1, 2, 32], strides = [1, 1, 1]} : vector<8x2x32xf32> to vector<1x2x32xf32>
    %30 = vector.shape_cast %29 : vector<1x2x32xf32> to vector<2x32xf32>
    %cst_10 = arith.constant dense<0.000000e+00> : vector<2x32xf32>
    %31 = tpu.matmul %28, %10, %cst_10 {dimension_numbers = #tpu.dot_dimension_numbers<[1], [0], [0], [1], [0, 0, 1, 1], [], []>} : vector<2x32xf32>, vector<32x32xf32>, vector<2x32xf32> -> vector<2x32xf32>
    %32 = arith.addf %30, %31 : vector<2x32xf32>
    %33 = math.tanh %32 : vector<2x32xf32>
    %34 = vector.extract_strided_slice %9 {offsets = [5, 0, 0], sizes = [1, 2, 32], strides = [1, 1, 1]} : vector<8x2x32xf32> to vector<1x2x32xf32>
    %35 = vector.shape_cast %34 : vector<1x2x32xf32> to vector<2x32xf32>
    %cst_11 = arith.constant dense<0.000000e+00> : vector<2x32xf32>
    %36 = tpu.matmul %33, %10, %cst_11 {dimension_numbers = #tpu.dot_dimension_numbers<[1], [0], [0], [1], [0, 0, 1, 1], [], []>} : vector<2x32xf32>, vector<32x32xf32>, vector<2x32xf32> -> vector<2x32xf32>
    %37 = arith.addf %35, %36 : vector<2x32xf32>
    %38 = math.tanh %37 : vector<2x32xf32>
    %39 = vector.extract_strided_slice %9 {offsets = [6, 0, 0], sizes = [1, 2, 32], strides = [1, 1, 1]} : vector<8x2x32xf32> to vector<1x2x32xf32>
    %40 = vector.shape_cast %39 : vector<1x2x32xf32> to vector<2x32xf32>
    %cst_12 = arith.constant dense<0.000000e+00> : vector<2x32xf32>
    %41 = tpu.matmul %38, %10, %cst_12 {dimension_numbers = #tpu.dot_dimension_numbers<[1], [0], [0], [1], [0, 0, 1, 1], [], []>} : vector<2x32xf32>, vector<32x32xf32>, vector<2x32xf32> -> vector<2x32xf32>
    %42 = arith.addf %40, %41 : vector<2x32xf32>
    %43 = math.tanh %42 : vector<2x32xf32>
    %44 = vector.extract_strided_slice %9 {offsets = [7, 0, 0], sizes = [1, 2, 32], strides = [1, 1, 1]} : vector<8x2x32xf32> to vector<1x2x32xf32>
    %45 = vector.shape_cast %44 : vector<1x2x32xf32> to vector<2x32xf32>
    %cst_13 = arith.constant dense<0.000000e+00> : vector<2x32xf32>
    %46 = tpu.matmul %43, %10, %cst_13 {dimension_numbers = #tpu.dot_dimension_numbers<[1], [0], [0], [1], [0, 0, 1, 1], [], []>} : vector<2x32xf32>, vector<32x32xf32>, vector<2x32xf32> -> vector<2x32xf32>
    %47 = arith.addf %45, %46 : vector<2x32xf32>
    %48 = math.tanh %47 : vector<2x32xf32>
    %c0_14 = arith.constant 0 : index
    %c0_15 = arith.constant 0 : index
    %49 = vector.load %arg4[%c0_14, %c0_15] : memref<32x128xf32, #tpu.memory_space<vmem>>, vector<32x128xf32>
    %cst_16 = arith.constant dense<0.000000e+00> : vector<2x128xf32>
    %50 = tpu.matmul %48, %49, %cst_16 {dimension_numbers = #tpu.dot_dimension_numbers<[1], [0], [0], [1], [0, 0, 1, 1], [], []>} : vector<2x32xf32>, vector<32x128xf32>, vector<2x128xf32> -> vector<2x128xf32>
    %c0_17 = arith.constant 0 : index
    %c0_18 = arith.constant 0 : index
    %51 = vector.load %arg5[%c0_17, %c0_18] : memref<1x128xf32, #tpu.memory_space<vmem>>, vector<1x128xf32>
    %52 = vector.broadcast %51 : vector<1x128xf32> to vector<2x128xf32>
    %53 = arith.addf %50, %52 : vector<2x128xf32>
    %c0_19 = arith.constant 0 : index
    %c0_20 = arith.constant 0 : index
    %54 = vector.load %arg6[%c0_19, %c0_20] : memref<2x128xf32, #tpu.memory_space<vmem>>, vector<2x128xf32>
    tpu.vector_store %arg6[%c0_19, %c0_20], %53 {strides = array<i32>} : memref<2x128xf32, #tpu.memory_space<vmem>>, vector<2x128xf32>,
    return
  }
}

</mosaic_0001>

<bundles_post_ra>
// kernel: tpu_custom_call.1
= control target key start
LH: loop header
LB: loop body
LE: loop exit
PB: predicated region body
PF: predicated region fallthrough
CT: control target
= control target key end

     0   :  { %11 = vsyncpa [#allocation3], 0  ;;  %s1253_s0 = inlined_call_operand.vmem [shape: f32[8,2,1], index: 0, kind: input, shape index: {}]   ;;  %s1254_s1 = inlined_call_operand.vmem [shape: f32[1,32], index: 1, kind: input, shape index: {}]   ;;  %s1255_s2 = inlined_call_operand.hbm [shape: f32[1,32], index: 2, kind: input, shape index: {}]   ;;  %s1256_s3 = inlined_call_operand.hbm [shape: f32[32,32], index: 3, kind: input, shape index: {}]   ;;  %s1257_s4 = inlined_call_operand.vmem [shape: f32[32,128], index: 4, kind: input, shape index: {}]   ;;  %s1258_s5 = inlined_call_operand.vmem [shape: f32[1,128], index: 5, kind: input, shape index: {}]   ;;  %s1259_s6 = inlined_call_operand.hbm [shape: f32[2,128], index: 6, kind: output, shape index: {}]  }
   0x1   :  { %12 = vsyncpa [#allocation6], 0 }
   0x2   :  { %13 = vsyncpa [#allocation4], 0  ;;  %s1046_s21 = smov [#allocation2]   ;;  %s1047_s23 = smov [#allocation5]  }
   0x3   :  { %s24_s22 = sshll.u32 %s1046_s21, 4  ;;  %s33_s24 = sshll.u32 %s1047_s23, 4  ;;  %s25_s22 = int_to_ptr.vmem [resolvable:$true] %s24_s22  ;;  %s1090_s24 = int_to_ptr.vmem [resolvable:$true] %s33_s24 }
   0x4   :  { %s974_s27 = scalar_lea.hbm %s1255_s2, 16 }
   0x5   :  { %p975_p0 = scmp.ne.s32.totalorder %s1255_s2, %s974_s27  ;;  %p978_p1 = scmp.lt.u32.totalorder %s974_s27, %s1255_s2 }
   0x7   :  { %p980_p2 = pnand %p978_p1, %p975_p0 }
   0x9   :  { %983 = shalt.err (!%p980_p2)
}
   0xa   :  { %s984_s8 = scalar_lea.vmem %s25_s22, 16  ;;  %s988_s9 = scalar_lea.vmem %s25_s22, 32 }
   0xb   :  { %p985_p3 = scmp.ne.s32.totalorder %s25_s22, %s984_s8  ;;  %p989_p4 = scmp.lt.s32.totalorder %s25_s22, %s25_s22 }
   0xc   :  { %p990_p5 = scmp.lt.s32.totalorder %s988_s9, %s984_s8 }
   0xe   :  { %p991_p6 = por %p990_p5, %p989_p4 }
  0x10   :  { %p992_p7 = pnand %p991_p6, %p985_p3 }
  0x12   :  { %995 = shalt.err (!%p992_p7)
}
  0x13   :  { %27 = dma.hbm_to_vmem [thread:$0]  %s1255_s2, 16, %s25_s22, [#allocation3]  }
  0x14   :  { %s996_s14 = scalar_lea.hbm %s1256_s3, 512 }
  0x15   :  { %p997_p8 = scmp.ne.s32.totalorder %s1256_s3, %s996_s14  ;;  %p1000_p9 = scmp.lt.u32.totalorder %s996_s14, %s1256_s3 }
  0x17   :  { %p1002_p10 = pnand %p1000_p9, %p997_p8 }
  0x19   :  { %1005 = shalt.err (!%p1002_p10)
}
  0x1a   :  { %s1006_s19 = scalar_lea.vmem %s1090_s24, 512  ;;  %p1011_p12 = scmp.lt.s32.totalorder %s1090_s24, %s1090_s24 }
  0x1b   :  { %p1007_p11 = scmp.ne.s32.totalorder %s1090_s24, %s1006_s19  ;;  %p1012_p13 = scmp.lt.s32.totalorder %s1006_s19, %s1006_s19 }
  0x1d   :  { %p1013_p0 = por %p1012_p13, %p1011_p12 }
  0x1f   :  { %p1014_p1 = pnand %p1013_p0, %p1007_p11 }
  0x21   :  { %1017 = shalt.err (!%p1014_p1)
}
  0x22   :  { %s1048_s2 = smov 128   ;;  %s1049_s20 = smov 8  }
  0x23   :  { %39 = dma.hbm_to_vmem [thread:$0]  %s1256_s3, 512, %s1090_s24, [#allocation6], %s1048_s2, %s1048_s2, %s1049_s20  }
  0x24   :  { %1040 = dma.done.wait [#allocation3], 16  }
  0x25   :  { %1041 = vsyncadd [#allocation3], 4294967280 }
  0x26   :  { %1042 = dma.done.wait [#allocation6], 512  }
  0x27   :  { %1043 = vsyncadd [#allocation6], 4294966784  ;;  %v1050_v0 = vmov 0   ;;  %v50_v1 = vld [vmem:[%s1253_s0] sm:$0x3]  ;;  %v1051_v4 = vmov 0.0|0.0  }
  0x28   :  { %956 = vset.pattern.permute.xlu0 %v1050_v0  ;;  %957 = vset.pattern.permute.xlu1 %v1050_v0  ;;  %v51_v2 = vld [vmem:[%s1253_s0 + $0x2] sm:$0x3]  ;;  %v54_v3 = vld [vmem:[%s1253_s0 + $0x8] sm:$0x3]  ;;  %v129_v6 = vld [vmem:[#allocation5 + $0x8] sm:$0xff]  ;;  %vm1052_vm0 = vmmov 0  }
  0x29   :  { %61 = vperm.xlu0 %956, %v50_v1   ;;  %899 = vmatprep.subr.bf16.mxu0 %v1051_v4  ;;  %v128_v5 = vld [vmem:[#allocation5] sm:$0xff]  ;;  %v56_v8 = vld [vmem:[%s1253_s0 + $0xc] sm:$0x3]  ;;  %v130_v9 = vld [vmem:[#allocation5 + $0x10] sm:$0xff]  ;;  %v1053_v12 = vmov 0.0   ;;  %vm133_vm1 = vcmask 261120  }
  0x2a   :  { %905 = vmatprep.subr.bf16.mxu1 %v1051_v4  ;;  %v1132_v7 = vpack.c.bf16 %v129_v6, %v128_v5  ;;  %v131_v10 = vld [vmem:[#allocation5 + $0x18] sm:$0xff]  ;;  %819 = vmatprep.mubr.msk.f32.mxu0 %vm1052_vm0, %v1053_v12  ;;  %v52_v19 = vld [vmem:[%s1253_s0 + $0x4] sm:$0x3]  ;;  %v53_v20 = vld [vmem:[%s1253_s0 + $0x6] sm:$0x3] }
  0x2b   :  { %v1140_v11 = vpack.c.bf16 %v131_v10, %v130_v9  ;;  %830 = vmatprep.mubr.msk.f32.mxu1 %vm1052_vm0, %v1053_v12  ;;  %v1154_v13 = vld [vmem:[%s1254_s1] ss:$0 sm:$0xff]  ;;  %71 = vperm.xlu1 %957, %v52_v19   ;;  %v55_v21 = vld [vmem:[%s1253_s0 + $0xa] sm:$0x3]  ;;  %v57_v22 = vld [vmem:[%s1253_s0 + $0xe] sm:$0x3] }
  0x2c   :  { %901 = vmatpush3.bf16.msra.mxu0 %v1132_v7  ;;  %907 = vmatpush3.bf16.msra.mxu1 %v1132_v7  ;;  %v1156_v14 = vld [vmem:[#allocation2] ss:$0 sm:$0xff]  ;;  %v662_v6 = vld [vmem:[%s1257_s4 + $0x18] sm:$0xff] }
  0x2d   :  { %66 = vperm.xlu0 %956, %v51_v2   ;;  %902 = vmatprep.subr.bf16.mxu0 %v1051_v4  ;;  %v659_v1 = vld [vmem:[%s1257_s4] sm:$0xff]  ;;  %v660_v2 = vld [vmem:[%s1257_s4 + $0x8] sm:$0xff] }
  0x2e   :  { %908 = vmatprep.subr.bf16.mxu1 %v1051_v4  ;;  %v942_v5 = vpack.c.bf16 %v660_v2, %v659_v1 }
  0x2f   :  { %76 = vperm.xlu1 %957, %v53_v20  }
  0x30   :  { %904 = vmatpush3.bf16.msra.mxu0 %v1140_v11  ;;  %910 = vmatpush3.bf16.msra.mxu1 %v1140_v11 }
  0x31   :  { %81 = vperm.xlu0 %956, %v54_v3   ;;  %911 = vmatprep.subr.bf16.mxu0 %v1051_v4  ;;  %v661_v3 = vld [vmem:[%s1257_s4 + $0x10] sm:$0xff]  ;;  %s1054_s4 = smov [#allocation7]  }
  0x32   :  { %917 = vmatprep.subr.bf16.mxu1 %v1051_v4  ;;  %s750_s23 = sshll.u32 %s1054_s4, 4  ;;  %s751_s23 = int_to_ptr.vmem [resolvable:$true] %s750_s23 }
  0x33   :  { %86 = vperm.xlu1 %957, %v55_v21   ;;  %s1018_s25 = scalar_lea.vmem %s751_s23, 32  ;;  %p1023_p3 = scmp.lt.s32.totalorder %s751_s23, %s751_s23 }
  0x34   :  { %p1019_p2 = scmp.ne.s32.totalorder %s751_s23, %s1018_s25  ;;  %p1024_p4 = scmp.lt.s32.totalorder %s1018_s25, %s1018_s25 }
  0x35   :  { %91 = vperm.xlu0 %956, %v56_v8  }
  0x36   :  { %p1025_p5 = por %p1024_p4, %p1023_p3 }
  0x37   :  { %96 = vperm.xlu1 %957, %v57_v22  }
  0x38   :  { %p1026_p6 = pnand %p1025_p5, %p1019_p2 }
  0xa8   :  { %v62_v15 = vpop.permute.xlu0 %61 }
  0xa9   :  { %v105_v16 = vmul.f32 %v1154_v13, %v62_v15 }
  0xaa   :  { %v72_v30 = vpop.permute.xlu1 %71 }
  0xab   :  { %v120_v17 = vadd.f32 %v1156_v14, %v105_v16  ;;  %v107_v31 = vmul.f32 %v1154_v13, %v72_v30 }
  0xac   :  { %v67_v23 = vpop.permute.xlu0 %66 }
  0xad   :  { %958 = vtanh.f32 %v120_v17  ;;  %v106_v24 = vmul.f32 %v1154_v13, %v67_v23  ;;  %v122_v32 = vadd.f32 %v1156_v14, %v107_v31  ;;  %v769_v17 = vld [vmem:[%s1258_s5] ss:$0 sm:$0xff] }
  0xae   :  { %v77_v37 = vpop.permute.xlu1 %76 }
  0xaf   :  { %v121_v25 = vadd.f32 %v1156_v14, %v106_v24  ;;  %v108_v38 = vmul.f32 %v1154_v13, %v77_v37 }
  0xb0   :  { %v82_v44 = vpop.permute.xlu0 %81 }
  0xb1   :  { %v123_v39 = vadd.f32 %v1156_v14, %v108_v38  ;;  %v109_v45 = vmul.f32 %v1154_v13, %v82_v44 }
  0xb2   :  { %v87_v51 = vpop.permute.xlu1 %86 }
  0xb3   :  { %v124_v46 = vadd.f32 %v1156_v14, %v109_v45  ;;  %v110_v52 = vmul.f32 %v1154_v13, %v87_v51 }
  0xb4   :  { %v92_v58 = vpop.permute.xlu0 %91 }
  0xb5   :  { %v125_v53 = vadd.f32 %v1156_v14, %v110_v52  ;;  %v111_v59 = vmul.f32 %v1154_v13, %v92_v58 }
  0xb6   :  { %v97_v8 = vpop.permute.xlu1 %96 }
  0xb7   :  { %v959_v18 = vpop.eup %958  ;;  %v126_v60 = vadd.f32 %v1156_v14, %v111_v59  ;;  %v112_v9 = vmul.f32 %v1154_v13, %v97_v8 }
  0xb8   :  { %820 = vmatmul.mubr.msk.f32.vlgmr.msra.gmra.mrb[0].mxu0 %vm133_vm1, %v959_v18 }
  0xb9   :  { %913 = vmatpush3.bf16.msra.mxu0 %v1132_v7  ;;  %841 = vmatprep.mubr.msk.f32.mxu0 %vm1052_vm0, %v1053_v12  ;;  %v127_v10 = vadd.f32 %v1156_v14, %v112_v9 }
  0xba   :  { %914 = vmatprep.subr.bf16.mxu0 %v1051_v4 }
  0xbd   :  { %916 = vmatpush3.bf16.msra.mxu0 %v1140_v11 }
  0xbe   :  { %923 = vmatprep.subr.bf16.mxu0 %v1051_v4 }
 0x18b   :  { %v203_v26 = vpop.f32.mrb[0].mxu0 }
 0x18c   :  { %v207_v27 = vadd.f32 %v203_v26, %v121_v25  ;;  %v821_v28 = vpop.f32.mrb[1].mxu0 }
 0x18e   :  { %960 = vtanh.f32 %v207_v27 }
 0x198   :  { %v961_v29 = vpop.eup %960 }
 0x199   :  { %831 = vmatmul.mubr.msk.f32.vlgmr.msra.gmra.mrb[0].mxu1 %vm133_vm1, %v961_v29 }
 0x19a   :  { %919 = vmatpush3.bf16.msra.mxu1 %v1132_v7  ;;  %852 = vmatprep.mubr.msk.f32.mxu1 %vm1052_vm0, %v1053_v12 }
 0x19b   :  { %920 = vmatprep.subr.bf16.mxu1 %v1051_v4 }
 0x19e   :  { %922 = vmatpush3.bf16.msra.mxu1 %v1140_v11 }
 0x19f   :  { %929 = vmatprep.subr.bf16.mxu1 %v1051_v4 }
 0x26c   :  { %v278_v33 = vpop.f32.mrb[0].mxu1 }
 0x26d   :  { %v282_v34 = vadd.f32 %v278_v33, %v122_v32  ;;  %v832_v35 = vpop.f32.mrb[1].mxu1 }
 0x26f   :  { %962 = vtanh.f32 %v282_v34 }
 0x279   :  { %v963_v36 = vpop.eup %962 }
 0x27a   :  { %842 = vmatmul.mubr.msk.f32.vlgmr.msra.gmra.mrb[2].mxu0 %vm133_vm1, %v963_v36 }
 0x27b   :  { %925 = vmatpush3.bf16.msra.mxu0 %v1132_v7  ;;  %863 = vmatprep.mubr.msk.f32.mxu0 %vm1052_vm0, %v1053_v12 }
 0x27c   :  { %926 = vmatprep.subr.bf16.mxu0 %v1051_v4 }
 0x27f   :  { %928 = vmatpush3.bf16.msra.mxu0 %v1140_v11 }
 0x280   :  { %935 = vmatprep.subr.bf16.mxu0 %v1051_v4 }
 0x34d   :  { %v353_v40 = vpop.f32.mrb[2].mxu0 }
 0x34e   :  { %v357_v41 = vadd.f32 %v353_v40, %v123_v39  ;;  %v843_v42 = vpop.f32.mrb[3].mxu0 }
 0x350   :  { %964 = vtanh.f32 %v357_v41 }
 0x35a   :  { %v965_v43 = vpop.eup %964 }
 0x35b   :  { %853 = vmatmul.mubr.msk.f32.vlgmr.msra.gmra.mrb[2].mxu1 %vm133_vm1, %v965_v43 }
 0x35c   :  { %931 = vmatpush3.bf16.msra.mxu1 %v1132_v7  ;;  %874 = vmatprep.mubr.msk.f32.mxu1 %vm1052_vm0, %v1053_v12 }
 0x35d   :  { %932 = vmatprep.subr.bf16.mxu1 %v1051_v4 }
 0x360   :  { %934 = vmatpush3.bf16.msra.mxu1 %v1140_v11 }
 0x361   :  { %941 = vmatprep.subr.bf16.mxu1 %v1051_v4 }
 0x42e   :  { %v428_v47 = vpop.f32.mrb[2].mxu1 }
 0x42f   :  { %v432_v48 = vadd.f32 %v428_v47, %v124_v46  ;;  %v854_v49 = vpop.f32.mrb[3].mxu1 }
 0x431   :  { %966 = vtanh.f32 %v432_v48 }
 0x43b   :  { %v967_v50 = vpop.eup %966 }
 0x43c   :  { %864 = vmatmul.mubr.msk.f32.vlgmr.msra.gmra.mrb[4].mxu0 %vm133_vm1, %v967_v50 }
 0x43d   :  { %937 = vmatpush3.bf16.msra.mxu0 %v1132_v7  ;;  %885 = vmatprep.mubr.msk.f32.mxu0 %vm1052_vm0, %v1053_v12  ;;  %v945_v7 = vpack.c.bf16 %v662_v6, %v661_v3 }
 0x43e   :  { %938 = vmatprep.subr.bf16.mxu0 %v1051_v4 }
 0x441   :  { %940 = vmatpush3.bf16.msra.mxu0 %v1140_v11 }
 0x50f   :  { %v503_v54 = vpop.f32.mrb[4].mxu0 }
 0x510   :  { %v507_v55 = vadd.f32 %v503_v54, %v125_v53  ;;  %v865_v56 = vpop.f32.mrb[5].mxu0 }
 0x512   :  { %968 = vtanh.f32 %v507_v55 }
 0x51c   :  { %v969_v57 = vpop.eup %968 }
 0x51d   :  { %875 = vmatmul.mubr.msk.f32.vlgmr.msra.gmra.mrb[4].mxu1 %vm133_vm1, %v969_v57 }
 0x51e   :  { %896 = vmatprep.mubr.msk.f32.mxu1 %vm1052_vm0, %v1053_v12  ;;  %943 = vmatpush3.bf16.msra.mxu1 %v942_v5 }
 0x51f   :  { %944 = vmatprep.subr.bf16.mxu1 %v1051_v4 }
 0x522   :  { %946 = vmatpush3.bf16.msra.mxu1 %v945_v7 }
 0x5f0   :  { %v578_v61 = vpop.f32.mrb[4].mxu1 }
 0x5f1   :  { %v582_v62 = vadd.f32 %v578_v61, %v126_v60  ;;  %v876_v63 = vpop.f32.mrb[5].mxu1 }
 0x5f3   :  { %970 = vtanh.f32 %v582_v62 }
 0x5fd   :  { %v971_v0 = vpop.eup %970 }
 0x5fe   :  { %886 = vmatmul.mubr.msk.f32.vlgmr.msra.gmra.mrb[6].mxu0 %vm133_vm1, %v971_v0 }
 0x6d1   :  { %v653_v11 = vpop.f32.mrb[6].mxu0 }
 0x6d2   :  { %v657_v12 = vadd.f32 %v653_v11, %v127_v10  ;;  %v887_v15 = vpop.f32.mrb[7].mxu0 }
 0x6d4   :  { %972 = vtanh.f32 %v657_v12 }
 0x6de   :  { %v973_v16 = vpop.eup %972 }
 0x6df   :  { %897 = vmatmul.mubr.msk.f32.vlgmr.msra.gmra.mrb[6].mxu1 %vm133_vm1, %v973_v16 }
 0x7b2   :  { %v739_v4 = vpop.f32.mrb[6].mxu1 }
 0x7b3   :  { %v740_v18 = vadd.f32 %v769_v17, %v739_v4  ;;  %v898_v19 = vpop.f32.mrb[7].mxu1 }
 0x7b5   :  { %743 = vst [vmem:[#allocation7] sm:$0x3] %v740_v18 }
 0x7b6   :  { %1029 = shalt.err (!%p1026_p6)
}
 0x7b7   :  { %s1030_s28 = scalar_lea.hbm %s1259_s6, 32 }
 0x7b8   :  { %p1031_p7 = scmp.ne.s32.totalorder %s1259_s6, %s1030_s28  ;;  %p1034_p8 = scmp.lt.u32.totalorder %s1030_s28, %s1259_s6 }
 0x7ba   :  { %p1036_p9 = pnand %p1034_p8, %p1031_p7 }
 0x7bc   :  { %1039 = shalt.err (!%p1036_p9)
}
 0x7bd   :  { %753 = dma.vmem_to_hbm [thread:$0]  %s751_s23, 32, %s1259_s6, [#allocation4]  }
 0x7be   :  { %1044 = dma.done.wait [#allocation4], 32  }
 0x7bf   :  { %1045 = vsyncadd [#allocation4], 4294967264 }
 0x7c0   :  { %757 = vsyncpa [#allocation3], 1 }
 0x7c1   :  { %758 = vsyncpa [#allocation6], 1 }
 0x7c2   :  { %759 = vsyncpa [#allocation4], 1 }

</bundles_post_ra>
